<compile_context>
chip_gen: v7x
topology: tpu7x:2x2x1
jax: 0.10.0
libtpu: 0.0.40
codegen_flags: <defaults>
</compile_context>

<pallas_src>
import jax
import jax.numpy as jnp
from jax.experimental import pallas as pl
from jax.experimental.pallas import tpu as pltpu

_PACK = 16          # rows packed per lane-dense "super-row" (16*8 = 128 lanes)
_TM_CAP_PACKED = 512    # packed rows/tile: ~2.25 MiB per buffer (x + out)
_TM_CAP_PLAIN = 2048    # plain rows/tile (lane-padded in VMEM): ~2 MiB per buffer


def _round_up(n, m):
    return ((n + m - 1) // m) * m


def linear_hardsigmoid_kernel(x_ref, w_ref, b_ref, o_ref):
    # x_ref: (TM, K)   w_ref: (K, N) = folded weight   b_ref: (1, N) = folded bias
    # o_ref: (TM, N)
    y = jnp.dot(x_ref[...], w_ref[...], preferred_element_type=jnp.float32)
    y = y + b_ref[...]                               # broadcast over rows
    o_ref[...] = jnp.clip(y, 0.0, 1.0).astype(o_ref.dtype)


def prepare_params(weight, bias, copies=_PACK):
    """Fold the hardsigmoid affine into the Linear params (do once at init).

    weight: (8, 64) PyTorch layout, bias: (8,).
    Returns both the plain folded params and the lane-dense block-diagonal pack.
    """
    w_s = (weight.T / 6.0).astype(weight.dtype)                   # (64, 8)
    b_s = ((bias + 3.0) / 6.0).reshape(1, -1).astype(bias.dtype)  # (1, 8)
    # Block-diagonal pack: 16 copies of W_s on the diagonal -> (1024, 128).
    w_bd = jnp.kron(jnp.eye(copies, dtype=w_s.dtype), w_s)        # (copies*64, copies*8)
    b_bd = jnp.tile(b_s, (1, copies))                             # (1, copies*8)
    return {"w_s": w_s, "b_s": b_s, "w_bd": w_bd, "b_bd": b_bd, "copies": copies}


def _pick_tile(rows, tm_cap):
    """Batch tile: aim for >= 4 grid steps (pipelining + v7x megacore), sublane-
    aligned, capped for VMEM safety, never larger than the (rounded) batch."""
    tm = _round_up(max(1, -(-rows // 4)), 8)
    tm = min(tm, tm_cap)
    tm = min(tm, _round_up(rows, 8))
    return max(tm, 8)


def _run(x2d, w, b, *, tm_cap):
    rows, K = x2d.shape
    N = w.shape[1]
    tm = _pick_tile(rows, tm_cap)
    grid = (pl.cdiv(rows, tm),)
    itemsize = x2d.dtype.itemsize
    cost = pl.CostEstimate(
        flops=2 * rows * K * N,
        transcendentals=0,
        bytes_accessed=(rows * K + rows * N + K * N + N) * itemsize,
    )
    return pl.pallas_call(
        linear_hardsigmoid_kernel,
        out_shape=jax.ShapeDtypeStruct((rows, N), x2d.dtype),
        grid=grid,
        in_specs=[
            pl.BlockSpec((tm, K), lambda i: (i, 0)),   # x: streamed over batch
            pl.BlockSpec((K, N), lambda i: (0, 0)),    # folded weight: VMEM-resident
            pl.BlockSpec((1, N), lambda i: (0, 0)),    # folded bias: VMEM-resident
        ],
        out_specs=pl.BlockSpec((tm, N), lambda i: (i, 0)),
        compiler_params=pltpu.CompilerParams(
            dimension_semantics=("parallel",),          # megacore batch split
        ),
        cost_estimate=cost,
    )(x2d, w, b)


def model_forward(x, params):
    """x: (B, 64) -> (B, 8), equivalent to clamp(Linear(x) + 3, 0, 6) / 6."""
    B, K = x.shape
    copies = params["copies"]
    n_out = params["b_s"].shape[1]
    if B >= copies and B % copies == 0:
        # Lane-dense path: free row-major views in/out, full-128-lane tiles,
        # unmasked stores, identical HBM traffic.
        xp = x.reshape(B // copies, copies * K)
        out_p = _run(xp, params["w_bd"], params["b_bd"], tm_cap=_TM_CAP_PACKED)
        return out_p.reshape(B, n_out)
    # Fallback for batches that are not a multiple of 16.
    return _run(x, params["w_s"], params["b_s"], tm_cap=_TM_CAP_PLAIN)


if __name__ == "__main__":
    key = jax.random.PRNGKey(0)
    kx, kw, kb = jax.random.split(key, 3)

    # Input consistent with the PyTorch module: x1 = torch.randn(1, 64)
    x = jax.random.normal(kx, (1, 64), dtype=jnp.float32)

    # Deterministic Linear(64, 8) init (PyTorch-style uniform +-1/sqrt(fan_in)).
    bound = 1.0 / jnp.sqrt(64.0)
    weight = jax.random.uniform(kw, (8, 64), jnp.float32, -bound, bound)
    bias = jax.random.uniform(kb, (8,), jnp.float32, -bound, bound)

    # One-time parameter fold / block-diag pack (not part of the per-call path).
    params = prepare_params(weight, bias)

    def ref_fn(xi):
        return jnp.clip(xi @ weight.T + bias + 3.0, 0.0, 6.0) / 6.0

    # Primary spec-shape run: B = 1 (plain path, single small tile).
    out = model_forward(x, params)
    jax.block_until_ready(out)
    assert out.shape == (1, 8)
    assert jnp.allclose(out, ref_fn(x), atol=1e-5, rtol=1e-5)

    # Lane-dense packed path with a multi-step grid:
    # B=1024 -> 64 packed rows, tm=16 -> 4 grid steps (pipelined, megacore-splittable).
    x_big = jax.random.normal(jax.random.PRNGKey(1), (1024, 64), dtype=jnp.float32)
    out_big = model_forward(x_big, params)
    jax.block_until_ready(out_big)
    assert out_big.shape == (1024, 8)
    assert jnp.allclose(out_big, ref_fn(x_big), atol=1e-5, rtol=1e-5)

    # Fallback path (B not a multiple of 16) with a partial last block.
    x_odd = jax.random.normal(jax.random.PRNGKey(2), (20, 64), dtype=jnp.float32)
    out_odd = model_forward(x_odd, params)
    jax.block_until_ready(out_odd)
    assert out_odd.shape == (20, 8)
    assert jnp.allclose(out_odd, ref_fn(x_odd), atol=1e-5, rtol=1e-5)

    print("KERNEL_OK")
</pallas_src>

<mosaic_0001>
module attributes {stable_mosaic.version = 11 : i64} {
  func.func @linear_hardsigmoid_kernel(%arg0: i32, %arg1: memref<8x64xf32, #tpu.memory_space<vmem>>, %arg2: memref<64x8xf32, #tpu.memory_space<vmem>>, %arg3: memref<1x8xf32, #tpu.memory_space<vmem>>, %arg4: memref<8x8xf32, #tpu.memory_space<vmem>>) attributes {dimension_semantics = [#tpu.dimension_semantics<parallel>], iteration_bounds = array<i64: 1>, scalar_prefetch = 0 : i64, scratch_operands = 0 : i64, tpu.core_type = #tpu.core_type<tc>, window_params = [{transform_indices = @transform_0, window_bounds = array<i64: 8, 64>}, {pipeline_mode = #tpu.pipeline_mode<synchronous>, transform_indices = @transform_1, window_bounds = array<i64: 64, 8>}, {pipeline_mode = #tpu.pipeline_mode<synchronous>, transform_indices = @transform_2, window_bounds = array<i64: 1, 8>}, {transform_indices = @transform_3, window_bounds = array<i64: 8, 8>}]} {
    %c0 = arith.constant 0 : index
    %c0_0 = arith.constant 0 : index
    %0 = vector.load %arg1[%c0, %c0_0] : memref<8x64xf32, #tpu.memory_space<vmem>>, vector<8x64xf32>
    %c0_1 = arith.constant 0 : index
    %c0_2 = arith.constant 0 : index
    %1 = vector.load %arg2[%c0_1, %c0_2] : memref<64x8xf32, #tpu.memory_space<vmem>>, vector<64x8xf32>
    %cst = arith.constant dense<0.000000e+00> : vector<8x8xf32>
    %2 = tpu.matmul %0, %1, %cst {dimension_numbers = #tpu.dot_dimension_numbers<[1], [0], [0], [1], [0, 0, 1, 1], [], []>} : vector<8x64xf32>, vector<64x8xf32>, vector<8x8xf32> -> vector<8x8xf32>
    %c0_3 = arith.constant 0 : index
    %c0_4 = arith.constant 0 : index
    %3 = vector.load %arg3[%c0_3, %c0_4] : memref<1x8xf32, #tpu.memory_space<vmem>>, vector<1x8xf32>
    %4 = vector.broadcast %3 : vector<1x8xf32> to vector<8x8xf32>
    %5 = arith.addf %2, %4 : vector<8x8xf32>
    %cst_5 = arith.constant 0.000000e+00 : f32
    %cst_6 = arith.constant 1.000000e+00 : f32
    %6 = vector.broadcast %cst_5 : f32 to vector<8x8xf32>
    %7 = arith.maximumf %6, %5 : vector<8x8xf32>
    %8 = vector.broadcast %cst_6 : f32 to vector<8x8xf32>
    %9 = arith.minimumf %8, %7 : vector<8x8xf32>
    %c0_7 = arith.constant 0 : index
    %c0_8 = arith.constant 0 : index
    %10 = vector.load %arg4[%c0_7, %c0_8] : memref<8x8xf32, #tpu.memory_space<vmem>>, vector<8x8xf32>
    tpu.vector_store %arg4[%c0_7, %c0_8], %9 {strides = array<i32>} : memref<8x8xf32, #tpu.memory_space<vmem>>, vector<8x8xf32>,
    return
  }
  func.func @transform_0(%arg0: i32) -> (i32, i32) {
    %c0_i32 = arith.constant 0 : i32
    %c0_i32_0 = arith.constant 0 : i32
    return %arg0, %c0_i32 : i32, i32
  }
  func.func @transform_1(%arg0: i32) -> (i32, i32) {
    %c0_i32 = arith.constant 0 : i32
    %c0_i32_0 = arith.constant 0 : i32
    %c0_i32_1 = arith.constant 0 : i32
    return %c0_i32, %c0_i32_0 : i32, i32
  }
  func.func @transform_2(%arg0: i32) -> (i32, i32) {
    %c0_i32 = arith.constant 0 : i32
    %c0_i32_0 = arith.constant 0 : i32
    %c0_i32_1 = arith.constant 0 : i32
    return %c0_i32, %c0_i32_0 : i32, i32
  }
  func.func @transform_3(%arg0: i32) -> (i32, i32) {
    %c0_i32 = arith.constant 0 : i32
    %c0_i32_0 = arith.constant 0 : i32
    return %arg0, %c0_i32 : i32, i32
  }
}

</mosaic_0001>

<bundles_post_ra>
// kernel: tpu_custom_call.1
= control target key start
LH: loop header
LB: loop body
LE: loop exit
PB: predicated region body
PF: predicated region fallthrough
CT: control target
= control target key end

     0   :  { %8 = vsyncpa [#allocation3], 0  ;;  %v197_v2 = vmov 0.0|0.0   ;;  %vm198_vm0 = vmmov 0   ;;  %v199_v6 = vmov 0.0   ;;  %vm31_vm1 = vcmask 523264   ;;  %s265_s0 = inlined_call_operand.vmem [shape: f32[1,64], index: 0, kind: input, shape index: {}]   ;;  %s266_s1 = inlined_call_operand.vmem [shape: f32[64,8], index: 1, kind: input, shape index: {}]   ;;  %s267_s2 = inlined_call_operand.vmem [shape: f32[1,8], index: 2, kind: input, shape index: {}]   ;;  %s268_s3 = inlined_call_operand.hbm [shape: f32[1,8], index: 3, kind: output, shape index: {}]  }
   0x1   :  { %v16_v0 = vld [vmem:[%s266_s1] sm:$0xff]  ;;  %v17_v1 = vld [vmem:[%s266_s1 + $0x8] sm:$0xff]  ;;  %155 = vmatprep.subr.bf16.mxu0 %v197_v2  ;;  %v18_v4 = vld [vmem:[%s266_s1 + $0x10] sm:$0xff]  ;;  %152 = vmatprep.mubr.msk.f32.mxu0 %vm198_vm0, %v199_v6  ;;  %vm107_vm2 = vcmask 64512  }
   0x2   :  { %v156_v3 = vpack.c.bf16 %v17_v1, %v16_v0  ;;  %v19_v5 = vld [vmem:[%s266_s1 + $0x18] sm:$0xff]  ;;  %v20_v8 = vld [vmem:[%s266_s1 + $0x20] sm:$0xff]  ;;  %v21_v9 = vld [vmem:[%s266_s1 + $0x28] sm:$0xff] }
   0x3   :  { %v159_v7 = vpack.c.bf16 %v19_v5, %v18_v4  ;;  %v162_v10 = vpack.c.bf16 %v21_v9, %v20_v8  ;;  %v22_v11 = vld [vmem:[%s266_s1 + $0x30] sm:$0xff]  ;;  %v23_v12 = vld [vmem:[%s266_s1 + $0x38] sm:$0xff]  ;;  %v15_v14 = vld [vmem:[%s265_s0] sm:$0xff] }
   0x4   :  { %157 = vmatpush3.bf16.msra.mxu0 %v156_v3  ;;  %v165_v13 = vpack.c.bf16 %v23_v12, %v22_v11  ;;  %v125_v15 = vld [vmem:[%s267_s2] ss:$0 sm:$0xff] }
   0x5   :  { %158 = vmatprep.subr.bf16.mxu0 %v197_v2 }
   0x8   :  { %160 = vmatpush3.bf16.msra.mxu0 %v159_v7 }
   0x9   :  { %161 = vmatprep.subr.bf16.mxu0 %v197_v2 }
   0xc   :  { %163 = vmatpush3.bf16.msra.mxu0 %v162_v10 }
   0xd   :  { %164 = vmatprep.subr.bf16.mxu0 %v197_v2 }
  0x10   :  { %166 = vmatpush3.bf16.msra.mxu0 %v165_v13 }
  0x13   :  { %153 = vmatmul.mubr.msk.f32.vlgmr.msra.gmra.mrb[0].mxu0 %vm31_vm1, %v15_v14 }
  0xe6   :  { %v101_v16 = vpop.f32.mrb[0].mxu0 }
  0xe7   :  { %v102_v17 = vadd.f32 %v125_v15, %v101_v16  ;;  %v154_v18 = vpop.f32.mrb[1].mxu0 }
  0xe9   :  { %v105_v19 = vmax.f32 %v102_v17, 0.0 }
  0xeb   :  { %v106_v20 = vmin.f32 %v105_v19, 1.0 }
  0xed   :  { %108 = vst.msk [vmem:[#allocation2] sm:$0xff] %vm107_vm2, %v106_v20 }
  0xee   :  { %113 = vsyncadd [#allocation3], 112  ;;  %s200_s1 = smov [#allocation2]  }
  0xef   :  { %s114_s5 = sshll.u32 %s200_s1, 4  ;;  %s115_s5 = int_to_ptr.vmem [resolvable:$true] %s114_s5 }
  0xf0   :  { %s173_s6 = scalar_lea.vmem %s115_s5, 16  ;;  %s177_s0 = scalar_lea.vmem %s115_s5, 128 }
  0xf1   :  { %p174_p0 = scmp.ne.s32.totalorder %s115_s5, %s173_s6  ;;  %p178_p1 = scmp.lt.s32.totalorder %s115_s5, %s115_s5 }
  0xf2   :  { %p179_p2 = scmp.lt.s32.totalorder %s177_s0, %s173_s6 }
  0xf4   :  { %p180_p3 = por %p179_p2, %p178_p1 }
  0xf6   :  { %p181_p4 = pnand %p180_p3, %p174_p0 }
  0xf8   :  { %184 = shalt.err (!%p181_p4)
}
  0xf9   :  { %s185_s8 = scalar_lea.hbm %s268_s3, 16 }
  0xfa   :  { %p186_p5 = scmp.ne.s32.totalorder %s268_s3, %s185_s8  ;;  %p189_p6 = scmp.lt.u32.totalorder %s185_s8, %s268_s3 }
  0xfc   :  { %p191_p7 = pnand %p189_p6, %p186_p5 }
  0xfe   :  { %194 = shalt.err (!%p191_p7)
}
  0xff   :  { %s201_s13 = smov 16   ;;  %s202_s14 = smov 1  }
 0x100   :  { %120 = dma.vmem_to_hbm [thread:$0]  %s115_s5, 16, %s268_s3, [#allocation3], %s201_s13, %s201_s13, %s202_s14  }
 0x101   :  { %195 = dma.done.wait [#allocation3], 128  }
 0x102   :  { %196 = vsyncadd [#allocation3], 4294967168 }
 0x103   :  { %124 = vsyncpa [#allocation3], 1 }

</bundles_post_ra>
